<compile_context>
chip_gen: v7x
topology: tpu7x:2x2x1
jax: 0.10.0
libtpu: 0.0.40
codegen_flags: <defaults>
</compile_context>

<pallas_src>
import functools

import jax
import jax.numpy as jnp
from jax.experimental import pallas as pl
from jax.experimental.pallas import tpu as pltpu


def _round_up(x, m):
    return (x + m - 1) // m * m


# ---------------------------------------------------------------------------
# Phase 1: per-channel mean / M2 of z = x @ W, accumulated over N tiles.
# ---------------------------------------------------------------------------
def _stats_kernel(x_ref, w_ref, mean_ref, m2_ref, *, n_valid, tile_n):
    i = pl.program_id(0)

    # Feed inputs at native dtype (bf16 is MXU-native); accumulate in f32.
    z = jnp.dot(x_ref[...], w_ref[...], preferred_element_type=jnp.float32)
    tn = z.shape[0]

    masked = (n_valid % tile_n) != 0          # static: only if last tile is partial
    if masked:
        row = jax.lax.broadcasted_iota(jnp.int32, (tn, 1), 0) + i * tile_n
        valid = row < n_valid
        n_t = jnp.minimum(tile_n, n_valid - i * tile_n).astype(jnp.float32)
        zs = jnp.where(valid, z, 0.0)
    else:
        n_t = jnp.float32(tile_n)
        zs = z

    # Row-sum on the MXU (ones-vector matmul) keeps XLU/VPU free for the M2 pass.
    ones_row = jnp.ones((1, tn), dtype=jnp.float32)
    sum_t = jnp.dot(ones_row, zs, preferred_element_type=jnp.float32)   # (1, C)
    mu_t = sum_t / n_t

    d = z - mu_t
    if masked:
        d = jnp.where(valid, d, 0.0)
    m2_t = jnp.sum(d * d, axis=0, keepdims=True)                        # (1, C)

    @pl.when(i == 0)
    def _():
        mean_ref[...] = mu_t
        m2_ref[...] = m2_t

    @pl.when(i > 0)
    def _():
        # Chan / chunked-Welford combine of (mean, M2) -- no big^2 - big^2.
        n_old = (i * tile_n).astype(jnp.float32)
        n_new = n_old + n_t
        mean_old = mean_ref[...]
        delta = mu_t - mean_old
        mean_ref[...] = mean_old + delta * (n_t / n_new)
        m2_ref[...] = m2_ref[...] + m2_t + (delta * delta) * (n_old * n_t / n_new)


# ---------------------------------------------------------------------------
# Phase 2: out = LeakyReLU((x @ W) * scale + shift)   (bias folded into shift)
# ---------------------------------------------------------------------------
def _norm_kernel(x_ref, w_ref, scale_ref, shift_ref, o_ref, *, negative_slope):
    z = jnp.dot(x_ref[...], w_ref[...], preferred_element_type=jnp.float32)
    y = z * scale_ref[...] + shift_ref[...]           # fused affine: 2 VPU passes
    o_ref[...] = jnp.maximum(y, negative_slope * y).astype(o_ref.dtype)


def unary_block(x, w, b, gamma, beta, num_groups, *, eps=1e-5,
                negative_slope=0.1, tile_n=None):
    N, C_in = x.shape
    C_out = w.shape[1]
    assert C_out % num_groups == 0
    cpg = C_out // num_groups

    # ---- tiling: lane-pad C_out to 128 for dense stores, pick an N tile ----
    c_pad = _round_up(C_out, 128)
    if tile_n is None:
        tile_n = 1024
        while tile_n > 128 and tile_n * c_pad * 4 > (2 << 20):   # ~2 MiB out tile
            tile_n //= 2
    tile_n = min(tile_n, _round_up(N, 8))
    assert tile_n % 8 == 0
    n_pad = _round_up(N, tile_n)
    num_tiles = n_pad // tile_n

    x_p = x if n_pad == N else jnp.pad(x, ((0, n_pad - N), (0, 0)))

    # ---------------- phase 1: accumulate per-channel stats -----------------
    mean_z, m2_c = pl.pallas_call(
        functools.partial(_stats_kernel, n_valid=N, tile_n=tile_n),
        out_shape=(jax.ShapeDtypeStruct((1, C_out), jnp.float32),
                   jax.ShapeDtypeStruct((1, C_out), jnp.float32)),
        grid_spec=pltpu.PrefetchScalarGridSpec(
            num_scalar_prefetch=0,
            grid=(num_tiles,),
            in_specs=[
                pl.BlockSpec((tile_n, C_in), lambda i: (i, 0)),
                pl.BlockSpec((C_in, C_out), lambda i: (0, 0)),     # resident
            ],
            out_specs=(
                pl.BlockSpec((1, C_out), lambda i: (0, 0)),        # accumulator
                pl.BlockSpec((1, C_out), lambda i: (0, 0)),        # accumulator
            ),
        ),
        compiler_params=pltpu.CompilerParams(
            dimension_semantics=("arbitrary",),
            vmem_limit_bytes=32 * 1024 * 1024,
        ),
    )(x_p, w)

    # -------- tiny O(C_out) group combine + affine fusion (plain JAX) -------
    mu_c = mean_z.reshape(C_out) + b          # per-channel mean of y = x@W + b
    m2_c = m2_c.reshape(C_out)                # per-channel sum of squared devs
    mu_cg = mu_c.reshape(num_groups, cpg)
    m2_cg = m2_c.reshape(num_groups, cpg)
    mu_g = jnp.mean(mu_cg, axis=1)
    m2_g = jnp.sum(m2_cg, axis=1) + N * jnp.sum((mu_cg - mu_g[:, None]) ** 2, axis=1)
    var_g = m2_g / (N * cpg)                  # biased variance (PyTorch GN)
    inv_std_g = jax.lax.rsqrt(var_g + eps)

    scale_c = gamma * jnp.repeat(inv_std_g, cpg)
    shift_c = beta + (b - jnp.repeat(mu_g, cpg)) * scale_c

    # ---------------- phase 2: normalize + activation (parallel) ------------
    if c_pad != C_out:
        w2 = jnp.pad(w, ((0, 0), (0, c_pad - C_out)))
        scale_c = jnp.pad(scale_c, (0, c_pad - C_out))
        shift_c = jnp.pad(shift_c, (0, c_pad - C_out))
    else:
        w2 = w

    out = pl.pallas_call(
        functools.partial(_norm_kernel, negative_slope=negative_slope),
        out_shape=jax.ShapeDtypeStruct((n_pad, c_pad), x.dtype),
        grid_spec=pltpu.PrefetchScalarGridSpec(
            num_scalar_prefetch=0,
            grid=(num_tiles,),
            in_specs=[
                pl.BlockSpec((tile_n, C_in), lambda i: (i, 0)),
                pl.BlockSpec((C_in, c_pad), lambda i: (0, 0)),     # resident
                pl.BlockSpec((1, c_pad), lambda i: (0, 0)),        # resident
                pl.BlockSpec((1, c_pad), lambda i: (0, 0)),        # resident
            ],
            out_specs=pl.BlockSpec((tile_n, c_pad), lambda i: (i, 0)),
        ),
        compiler_params=pltpu.CompilerParams(
            dimension_semantics=("parallel",),                     # both TCs on v7x
            vmem_limit_bytes=32 * 1024 * 1024,
        ),
    )(x_p, w2, scale_c.reshape(1, c_pad), shift_c.reshape(1, c_pad))

    return out[:N, :C_out]


def unary_block_ref(x, w, b, gamma, beta, num_groups):
    # pure-JAX reference matching the PyTorch semantics
    y = x @ w + b
    N, C = y.shape
    cpg = C // num_groups
    yg = y.reshape(N, num_groups, cpg)
    mean = yg.mean(axis=(0, 2), keepdims=True)
    var = ((yg - mean) ** 2).mean(axis=(0, 2), keepdims=True)
    yg = (yg - mean) * jax.lax.rsqrt(var + 1e-5)
    y = yg.reshape(N, C) * gamma + beta
    return jnp.where(y >= 0, y, 0.1 * y)


if __name__ == "__main__":
    key = jax.random.PRNGKey(0)
    k1, k2, k3, k4, k5 = jax.random.split(key, 5)

    # Small shapes consistent with UnaryBlock(in=32, out=64, groups=8)
    C_in, C_out, G = 32, 64, 8
    x = jax.random.normal(k1, (64, C_in), dtype=jnp.float32)
    w = jax.random.normal(k2, (C_in, C_out), dtype=jnp.float32) * (1.0 / jnp.sqrt(C_in))
    b = jax.random.normal(k3, (C_out,), dtype=jnp.float32) * 0.1
    gamma = 1.0 + 0.05 * jax.random.normal(k4, (C_out,), dtype=jnp.float32)
    beta = 0.05 * jax.random.normal(k5, (C_out,), dtype=jnp.float32)

    out = jax.block_until_ready(unary_block(x, w, b, gamma, beta, G))
    ref = unary_block_ref(x, w, b, gamma, beta, G)
    assert jnp.allclose(out, ref, atol=2e-3, rtol=2e-3), "mismatch (single tile)"

    # Exercise the multi-tile accumulation + masked last tile path.
    x2 = jax.random.normal(jax.random.PRNGKey(1), (200, C_in), dtype=jnp.float32)
    out2 = jax.block_until_ready(unary_block(x2, w, b, gamma, beta, G, tile_n=32))
    ref2 = unary_block_ref(x2, w, b, gamma, beta, G)
    assert jnp.allclose(out2, ref2, atol=2e-3, rtol=2e-3), "mismatch (multi tile)"

    print("KERNEL_OK")
</pallas_src>

<mosaic_0001>
module attributes {stable_mosaic.version = 11 : i64} {
  func.func @_stats_kernel(%arg0: i32, %arg1: memref<64x32xf32, #tpu.memory_space<vmem>>, %arg2: memref<32x64xf32, #tpu.memory_space<vmem>>, %arg3: memref<1x64xf32, #tpu.memory_space<vmem>>, %arg4: memref<1x64xf32, #tpu.memory_space<vmem>>) attributes {dimension_semantics = [#tpu.dimension_semantics<arbitrary>], iteration_bounds = array<i64: 1>, scalar_prefetch = 0 : i64, scratch_operands = 0 : i64, tpu.core_type = #tpu.core_type<tc>, window_params = [{transform_indices = @transform_0, window_bounds = array<i64: 64, 32>}, {pipeline_mode = #tpu.pipeline_mode<synchronous>, transform_indices = @transform_1, window_bounds = array<i64: 32, 64>}, {pipeline_mode = #tpu.pipeline_mode<synchronous>, transform_indices = @transform_2, window_bounds = array<i64: 1, 64>}, {pipeline_mode = #tpu.pipeline_mode<synchronous>, transform_indices = @transform_3, window_bounds = array<i64: 1, 64>}]} {
    %c0 = arith.constant 0 : index
    %c0_0 = arith.constant 0 : index
    %0 = vector.load %arg1[%c0, %c0_0] : memref<64x32xf32, #tpu.memory_space<vmem>>, vector<64x32xf32>
    %c0_1 = arith.constant 0 : index
    %c0_2 = arith.constant 0 : index
    %1 = vector.load %arg2[%c0_1, %c0_2] : memref<32x64xf32, #tpu.memory_space<vmem>>, vector<32x64xf32>
    %cst = arith.constant dense<0.000000e+00> : vector<64x64xf32>
    %2 = tpu.matmul %0, %1, %cst {dimension_numbers = #tpu.dot_dimension_numbers<[1], [0], [0], [1], [0, 0, 1, 1], [], []>} : vector<64x32xf32>, vector<32x64xf32>, vector<64x64xf32> -> vector<64x64xf32>
    %cst_3 = arith.constant 1.000000e+00 : f32
    %3 = vector.broadcast %cst_3 : f32 to vector<1x64xf32>
    %cst_4 = arith.constant dense<0.000000e+00> : vector<1x64xf32>
    %4 = tpu.matmul %3, %2, %cst_4 {dimension_numbers = #tpu.dot_dimension_numbers<[1], [0], [0], [1], [0, 0, 1, 1], [], []>} : vector<1x64xf32>, vector<64x64xf32>, vector<1x64xf32> -> vector<1x64xf32>
    %cst_5 = arith.constant 6.400000e+01 : f32
    %5 = vector.broadcast %cst_5 : f32 to vector<1x64xf32>
    %6 = arith.divf %4, %5 : vector<1x64xf32>
    %7 = vector.broadcast %6 : vector<1x64xf32> to vector<64x64xf32>
    %8 = arith.subf %2, %7 : vector<64x64xf32>
    %9 = arith.mulf %8, %8 : vector<64x64xf32>
    %cst_6 = arith.constant dense<0.000000e+00> : vector<64xf32>
    %10 = vector.multi_reduction <add>, %9, %cst_6 [0] : vector<64x64xf32> to vector<64xf32>
    %11 = vector.shape_cast %10 : vector<64xf32> to vector<1x64xf32>
    %c0_i32 = arith.constant 0 : i32
    %12 = arith.cmpi eq, %arg0, %c0_i32 : i32
    %13 = arith.extui %12 : i1 to i32
    %c0_i32_7 = arith.constant 0 : i32
    %14 = arith.cmpi ne, %13, %c0_i32_7 : i32
    scf.if %14 {
      %c0_11 = arith.constant 0 : index
      %c0_12 = arith.constant 0 : index
      %18 = vector.load %arg3[%c0_11, %c0_12] : memref<1x64xf32, #tpu.memory_space<vmem>>, vector<1x64xf32>
      tpu.vector_store %arg3[%c0_11, %c0_12], %6 {strides = array<i32>} : memref<1x64xf32, #tpu.memory_space<vmem>>, vector<1x64xf32>,
      %c0_13 = arith.constant 0 : index
      %c0_14 = arith.constant 0 : index
      %19 = vector.load %arg4[%c0_13, %c0_14] : memref<1x64xf32, #tpu.memory_space<vmem>>, vector<1x64xf32>
      tpu.vector_store %arg4[%c0_13, %c0_14], %11 {strides = array<i32>} : memref<1x64xf32, #tpu.memory_space<vmem>>, vector<1x64xf32>,
    } else {
    }
    %c0_i32_8 = arith.constant 0 : i32
    %15 = arith.cmpi sgt, %arg0, %c0_i32_8 : i32
    %16 = arith.extui %15 : i1 to i32
    %cst_9 = arith.constant 6.400000e+01 : f32
    %c0_i32_10 = arith.constant 0 : i32
    %17 = arith.cmpi ne, %16, %c0_i32_10 : i32
    scf.if %17 {
      %c64_i32 = arith.constant 64 : i32
      %18 = arith.muli %arg0, %c64_i32 : i32
      %19 = arith.sitofp %18 : i32 to f32
      %20 = arith.addf %19, %cst_9 : f32
      %c0_11 = arith.constant 0 : index
      %c0_12 = arith.constant 0 : index
      %21 = vector.load %arg3[%c0_11, %c0_12] : memref<1x64xf32, #tpu.memory_space<vmem>>, vector<1x64xf32>
      %22 = arith.subf %6, %21 : vector<1x64xf32>
      %23 = arith.divf %cst_9, %20 : f32
      %24 = vector.broadcast %23 : f32 to vector<1x64xf32>
      %25 = arith.mulf %22, %24 : vector<1x64xf32>
      %26 = arith.addf %21, %25 : vector<1x64xf32>
      %c0_13 = arith.constant 0 : index
      %c0_14 = arith.constant 0 : index
      %27 = vector.load %arg3[%c0_13, %c0_14] : memref<1x64xf32, #tpu.memory_space<vmem>>, vector<1x64xf32>
      tpu.vector_store %arg3[%c0_13, %c0_14], %26 {strides = array<i32>} : memref<1x64xf32, #tpu.memory_space<vmem>>, vector<1x64xf32>,
      %c0_15 = arith.constant 0 : index
      %c0_16 = arith.constant 0 : index
      %28 = vector.load %arg4[%c0_15, %c0_16] : memref<1x64xf32, #tpu.memory_space<vmem>>, vector<1x64xf32>
      %29 = arith.addf %28, %11 : vector<1x64xf32>
      %30 = arith.mulf %22, %22 : vector<1x64xf32>
      %31 = arith.mulf %19, %cst_9 : f32
      %32 = arith.divf %31, %20 : f32
      %33 = vector.broadcast %32 : f32 to vector<1x64xf32>
      %34 = arith.mulf %30, %33 : vector<1x64xf32>
      %35 = arith.addf %29, %34 : vector<1x64xf32>
      %c0_17 = arith.constant 0 : index
      %c0_18 = arith.constant 0 : index
      %36 = vector.load %arg4[%c0_17, %c0_18] : memref<1x64xf32, #tpu.memory_space<vmem>>, vector<1x64xf32>
      tpu.vector_store %arg4[%c0_17, %c0_18], %35 {strides = array<i32>} : memref<1x64xf32, #tpu.memory_space<vmem>>, vector<1x64xf32>,
    } else {
    }
    return
  }
  func.func @transform_0(%arg0: i32) -> (i32, i32) {
    %c0_i32 = arith.constant 0 : i32
    %c0_i32_0 = arith.constant 0 : i32
    return %arg0, %c0_i32 : i32, i32
  }
  func.func @transform_1(%arg0: i32) -> (i32, i32) {
    %c0_i32 = arith.constant 0 : i32
    %c0_i32_0 = arith.constant 0 : i32
    %c0_i32_1 = arith.constant 0 : i32
    return %c0_i32, %c0_i32_0 : i32, i32
  }
  func.func @transform_2(%arg0: i32) -> (i32, i32) {
    %c0_i32 = arith.constant 0 : i32
    %c0_i32_0 = arith.constant 0 : i32
    %c0_i32_1 = arith.constant 0 : i32
    return %c0_i32, %c0_i32_0 : i32, i32
  }
  func.func @transform_3(%arg0: i32) -> (i32, i32) {
    %c0_i32 = arith.constant 0 : i32
    %c0_i32_0 = arith.constant 0 : i32
    %c0_i32_1 = arith.constant 0 : i32
    return %c0_i32, %c0_i32_0 : i32, i32
  }
}

</mosaic_0001>

<bundles_post_ra>
// kernel: tpu_custom_call.1
= control target key start
LH: loop header
LB: loop body
LE: loop exit
PB: predicated region body
PF: predicated region fallthrough
CT: control target
= control target key end

     0   :  { %9 = vsyncpa [#allocation3], 0  ;;  %vm27_vm0 = vcmask 261120   ;;  %s587_s0 = inlined_call_operand.vmem [shape: f32[64,32], index: 0, kind: input, shape index: {}]   ;;  %s588_s1 = inlined_call_operand.vmem [shape: f32[32,64], index: 1, kind: input, shape index: {}]   ;;  %s589_s2 = inlined_call_operand.hbm [shape: f32[1,64], index: 2, kind: output, shape index: {0}]   ;;  %s590_s3 = inlined_call_operand.hbm [shape: f32[1,64], index: 3, kind: output, shape index: {1}]  }
   0x1   :  { %v23_v0 = vld [vmem:[%s588_s1] sm:$0xff]  ;;  %v24_v1 = vld [vmem:[%s588_s1 + $0x8] sm:$0xff]  ;;  %v25_v2 = vld [vmem:[%s588_s1 + $0x10] sm:$0xff] }
   0x2   :  { %v408_v3 = vpack.c.bf16 %v24_v1, %v23_v0  ;;  %v26_v4 = vld [vmem:[%s588_s1 + $0x18] sm:$0xff]  ;;  %v15_v5 = vld [vmem:[%s587_s0] sm:$0xff] }
   0x3   :  { %v412_v6 = vpack.c.bf16 %v26_v4, %v25_v2  ;;  %377 = vmatprep.mubr.msk.f32.mxu0 %vm27_vm0, %v15_v5 }
   0x4   :  { %409 = vmatprep.subr.bf16.mxu0 %v408_v3 }
   0x5   :  { %411 = vmatpush3.bf16.msra.mxu0 %v408_v3 }
   0x6   :  { %10 = vsyncpa [#allocation5], 0  ;;  %413 = vmatprep.subr.bf16.mxu0 %v412_v6  ;;  %v16_v7 = vld [vmem:[%s587_s0 + $0x8] sm:$0xff]  ;;  %v17_v8 = vld [vmem:[%s587_s0 + $0x10] sm:$0xff]  ;;  %v482_v14 = vmov 0.0|0.0   ;;  %vm483_vm1 = vmmov 0   ;;  %v233_v29 = vlaneseq }
   0x7   :  { %v18_v9 = vld [vmem:[%s587_s0 + $0x18] sm:$0xff]  ;;  %v19_v10 = vld [vmem:[%s587_s0 + $0x20] sm:$0xff]  ;;  %v20_v11 = vld [vmem:[%s587_s0 + $0x28] sm:$0xff]  ;;  %416 = vmatprep.subr.bf16.mxu1 %v482_v14  ;;  %v484_v15 = vmov 0.0   ;;  %vm157_vm2 = vcmask 523264   ;;  %v485_v28 = vmov 1.0  }
   0x8   :  { %v21_v12 = vld [vmem:[%s587_s0 + $0x30] sm:$0xff]  ;;  %v22_v13 = vld [vmem:[%s587_s0 + $0x38] sm:$0xff]  ;;  %405 = vmatprep.mubr.msk.f32.mxu1 %vm483_vm1, %v484_v15  ;;  %v234_v30 = vshrl.u32 %v233_v29, 7  ;;  %s486_s0 = smov [#allocation2]   ;;  %vm278_vm3 = vcmask 516096  }
   0x9   :  { %415 = vmatpush3.bf16.msra.mxu0 %v412_v6  ;;  %s317_s8 = sshll.u32 %s486_s0, 4  ;;  %s318_s8 = int_to_ptr.vmem [resolvable:$true] %s317_s8 }
   0xa   :  { %v235_v31 = vsub.s32 0, %v234_v30  ;;  %s434_s9 = scalar_lea.vmem %s318_s8, 16  ;;  %s438_s10 = scalar_lea.vmem %s318_s8, 32 }
   0xb   :  { %p435_p0 = scmp.ne.s32.totalorder %s318_s8, %s434_s9  ;;  %p439_p1 = scmp.lt.s32.totalorder %s318_s8, %s318_s8 }
   0xc   :  { %378 = vmatmul.mubr.msk.f32.vlgmr.msra.gmra.mrb[0].mxu0 %vm27_vm0, %v16_v7  ;;  %p440_p2 = scmp.lt.s32.totalorder %s438_s10, %s434_s9 }
   0xd   :  { %380 = vmatprep.mubr.msk.f32.mxu0 %vm27_vm0, %v17_v8 }
   0xe   :  { %p441_p3 = por %p440_p2, %p439_p1 }
  0x10   :  { %381 = vmatmul.mubr.msk.f32.gmra.mrb[2].mxu0 %vm27_vm0, %v18_v9  ;;  %p442_p4 = pnand %p441_p3, %p435_p0 }
  0x11   :  { %383 = vmatprep.mubr.msk.f32.mxu0 %vm27_vm0, %v19_v10 }
  0x14   :  { %384 = vmatmul.mubr.msk.f32.gmra.mrb[4].mxu0 %vm27_vm0, %v20_v11 }
  0x15   :  { %386 = vmatprep.mubr.msk.f32.mxu0 %vm27_vm0, %v21_v12 }
  0x18   :  { %387 = vmatmul.mubr.msk.f32.gmra.mrb[6].mxu0 %vm27_vm0, %v22_v13 }
  0xdf   :  { %v379_v16 = vpop.f32.mrb[0].mxu0 }
  0xe0   :  { %v118_v17 = vpop.f32.mrb[1].mxu0 }
  0xe1   :  { %v417_v18 = vpack.c.bf16 %v379_v16, %v118_v17 }
  0xe3   :  { %v382_v19 = vpop.f32.mrb[2].mxu0  ;;  %418 = vmatpush3.bf16.msra.mxu1 %v417_v18 }
  0xe4   :  { %v128_v20 = vpop.f32.mrb[3].mxu0  ;;  %419 = vmatprep.subr.bf16.mxu1 %v482_v14 }
  0xe5   :  { %v420_v21 = vpack.c.bf16 %v382_v19, %v128_v20 }
  0xe7   :  { %v385_v22 = vpop.f32.mrb[4].mxu0  ;;  %421 = vmatpush3.bf16.msra.mxu1 %v420_v21 }
  0xe8   :  { %v138_v23 = vpop.f32.mrb[5].mxu0  ;;  %422 = vmatprep.subr.bf16.mxu1 %v482_v14 }
  0xe9   :  { %v423_v24 = vpack.c.bf16 %v385_v22, %v138_v23 }
  0xeb   :  { %v388_v25 = vpop.f32.mrb[6].mxu0  ;;  %424 = vmatpush3.bf16.msra.mxu1 %v423_v24 }
  0xec   :  { %v148_v26 = vpop.f32.mrb[7].mxu0  ;;  %425 = vmatprep.subr.bf16.mxu1 %v482_v14 }
  0xed   :  { %v426_v27 = vpack.c.bf16 %v388_v25, %v148_v26 }
  0xef   :  { %427 = vmatpush3.bf16.msra.mxu1 %v426_v27 }
  0xf2   :  { %406 = vmatmul.mubr.msk.f32.vlgmr.msra.gmra.mrb[0].mxu1 %vm157_vm2, %v485_v28 }
 0x1c5   :  { %v227_v32 = vpop.f32.mrb[0].mxu1 }
 0x1c6   :  { %v232_v33 = vmul.f32 0.015625, %v227_v32  ;;  %v407_v34 = vpop.f32.mrb[1].mxu1 }
 0x1c8   :  { %v236_v35 = vrot.slane %v232_v33, %v235_v31  ;;  %279 = vst.msk [vmem:[#allocation2] sm:$0x1] %vm278_vm3, %v232_v33 }
 0x1c9   :  { %445 = shalt.err (!%p442_p4)
}
 0x1ca   :  { %s446_s13 = scalar_lea.hbm %s589_s2, 16 }
 0x1cb   :  { %p447_p5 = scmp.ne.s32.totalorder %s589_s2, %s446_s13  ;;  %p450_p6 = scmp.lt.u32.totalorder %s446_s13, %s589_s2 }
 0x1cd   :  { %p452_p7 = pnand %p450_p6, %p447_p5 }
 0x1cf   :  { %455 = shalt.err (!%p452_p7)
}
 0x1d0   :  { %320 = dma.vmem_to_hbm [thread:$0]  %s318_s8, 16, %s589_s2, [#allocation3]   ;;  %v237_v36 = vsub.f32 %v118_v17, %v236_v35  ;;  %v238_v37 = vsub.f32 %v379_v16, %v236_v35  ;;  %v239_v38 = vsub.f32 %v128_v20, %v236_v35  ;;  %v240_v39 = vsub.f32 %v382_v19, %v236_v35 }
 0x1d1   :  { %v241_v40 = vsub.f32 %v138_v23, %v236_v35  ;;  %v242_v41 = vsub.f32 %v385_v22, %v236_v35  ;;  %v243_v42 = vsub.f32 %v148_v26, %v236_v35  ;;  %v244_v43 = vsub.f32 %v388_v25, %v236_v35  ;;  %s487_s2 = smov [#allocation4]  }
 0x1d2   :  { %v245_v44 = vmul.f32 %v237_v36, %v237_v36  ;;  %v246_v45 = vmul.f32 %v238_v37, %v238_v37  ;;  %v247_v46 = vmul.f32 %v239_v38, %v239_v38  ;;  %v248_v47 = vmul.f32 %v240_v39, %v240_v39  ;;  %s327_s20 = sshll.u32 %s487_s2, 4  ;;  %s328_s20 = int_to_ptr.vmem [resolvable:$true] %s327_s20 }
 0x1d3   :  { %v249_v51 = vmul.f32 %v241_v40, %v241_v40  ;;  %v250_v54 = vmul.f32 %v242_v41, %v242_v41  ;;  %v251_v57 = vmul.f32 %v243_v42, %v243_v42  ;;  %v252_v60 = vmul.f32 %v244_v43, %v244_v43  ;;  %s456_s21 = scalar_lea.vmem %s328_s20, 16  ;;  %s460_s22 = scalar_lea.vmem %s328_s20, 32 }
 0x1d4   :  { %v253_v48 = vsel %vm157_vm2, %v245_v44, 0.0  ;;  %v254_v49 = vsel %vm157_vm2, %v246_v45, 0.0  ;;  %v256_v52 = vsel %vm157_vm2, %v247_v46, 0.0  ;;  %v258_v55 = vsel %vm157_vm2, %v248_v47, 0.0  ;;  %p457_p8 = scmp.ne.s32.totalorder %s328_s20, %s456_s21  ;;  %p461_p9 = scmp.lt.s32.totalorder %s328_s20, %s328_s20 }
 0x1d5   :  { %v255_v50 = vadd.f32 %v254_v49, %v253_v48  ;;  %v260_v58 = vsel %vm157_vm2, %v249_v51, 0.0  ;;  %v262_v61 = vsel %vm157_vm2, %v250_v54, 0.0  ;;  %v264_v63 = vsel %vm157_vm2, %v251_v57, 0.0  ;;  %p462_p10 = scmp.lt.s32.totalorder %s460_s22, %s456_s21 }
 0x1d6   :  { %v266_v1 = vsel %vm157_vm2, %v252_v60, 0.0 }
 0x1d7   :  { %v257_v53 = vadd.f32 %v256_v52, %v255_v50  ;;  %p463_p11 = por %p462_p10, %p461_p9 }
 0x1d9   :  { %v259_v56 = vadd.f32 %v258_v55, %v257_v53  ;;  %p464_p12 = pnand %p463_p11, %p457_p8 }
 0x1db   :  { %v261_v59 = vadd.f32 %v260_v58, %v259_v56 }
 0x1dd   :  { %v263_v62 = vadd.f32 %v262_v61, %v261_v59 }
 0x1df   :  { %v265_v0 = vadd.f32 %v264_v63, %v263_v62 }
 0x1e1   :  { %v267_v2 = vadd.f32 %v266_v1, %v265_v0 }
 0x1e3   :  { %v268_v3 = vrot.slane %v267_v2, 4 }
 0x1e5   :  { %v269_v4 = vadd.f32 %v268_v3, %v267_v2 }
 0x1e7   :  { %v270_v5 = vrot.slane %v269_v4, 2 }
 0x1e9   :  { %v271_v6 = vadd.f32 %v270_v5, %v269_v4 }
 0x1eb   :  { %v272_v7 = vrot.slane %v271_v6, 1 }
 0x1ed   :  { %v273_v8 = vadd.f32 %v272_v7, %v271_v6 }
 0x1ef   :  { %280 = vst.msk [vmem:[#allocation4] sm:$0x1] %vm278_vm3, %v273_v8 }
 0x1f0   :  { %467 = shalt.err (!%p464_p12)
}
 0x1f1   :  { %s468_s25 = scalar_lea.hbm %s590_s3, 16 }
 0x1f2   :  { %p469_p13 = scmp.ne.s32.totalorder %s590_s3, %s468_s25  ;;  %p472_p0 = scmp.lt.u32.totalorder %s468_s25, %s590_s3 }
 0x1f4   :  { %p474_p1 = pnand %p472_p0, %p469_p13 }
 0x1f6   :  { %477 = shalt.err (!%p474_p1)
}
 0x1f7   :  { %330 = dma.vmem_to_hbm [thread:$0]  %s328_s20, 16, %s590_s3, [#allocation5]  }
 0x1f8   :  { %478 = dma.done.wait [#allocation3], 16  }
 0x1f9   :  { %479 = vsyncadd [#allocation3], 4294967280 }
 0x1fa   :  { %480 = dma.done.wait [#allocation5], 16  }
 0x1fb   :  { %481 = vsyncadd [#allocation5], 4294967280 }
 0x1fc   :  { %337 = vsyncpa [#allocation3], 1 }
 0x1fd   :  { %338 = vsyncpa [#allocation5], 1 }

</bundles_post_ra>
